<compile_context>
chip_gen: v7x
topology: tpu7x:2x2x1
jax: 0.10.0
libtpu: 0.0.40
codegen_flags: <defaults>
</compile_context>

<pallas_src>
import math

import jax
import jax.numpy as jnp
from jax.experimental import pallas as pl
from jax.experimental.pallas import tpu as pltpu

LANE = 128
SUBLANE = 8


def _round_up(n, m):
    return ((n + m - 1) // m) * m


def _pad2d(a, rows, cols):
    return jnp.pad(a, ((0, rows - a.shape[0]), (0, cols - a.shape[1])))


def mlp_kernel(x_ref, w1_ref, b1_ref, w2_ref, b2_ref,
               w3_ref, b3_ref, w4_ref, b4_ref, o_ref):
    # Whole forward pass fused in VMEM for one batch tile.  x arrives as f32
    # (single HBM pass) and is cast to bf16 on-chip; all matmuls are bf16 x
    # bf16 -> f32 on the MXU, bias-add + ReLU in f32 on the VPU.
    x = x_ref[...].astype(jnp.bfloat16)
    h = jnp.dot(x, w1_ref[...], preferred_element_type=jnp.float32)
    h = jnp.maximum(h + b1_ref[...], 0.0)
    h = jnp.dot(h.astype(jnp.bfloat16), w2_ref[...],
                preferred_element_type=jnp.float32)
    h = jnp.maximum(h + b2_ref[...], 0.0)
    h = jnp.dot(h.astype(jnp.bfloat16), w3_ref[...],
                preferred_element_type=jnp.float32)
    h = jnp.maximum(h + b3_ref[...], 0.0)
    h = jnp.dot(h.astype(jnp.bfloat16), w4_ref[...],
                preferred_element_type=jnp.float32)
    o_ref[...] = jnp.maximum(h + b4_ref[...], 0.0).astype(o_ref.dtype)


def prepare_params(params):
    """One-time (outside the per-call path) weight prep:
      * hidden dims zero-padded 100 -> 128, output dim zero-padded 1 -> 128
        (padded bias entries are 0, so ReLU keeps padded lanes exactly 0),
      * the contraction dim of w1 stays 1701 so x never needs padding,
      * weights cast to bf16 (MXU-native); biases stay f32."""
    k, h1 = params["w1"].shape
    h2 = params["w2"].shape[1]
    h3 = params["w3"].shape[1]
    out = params["w4"].shape[1]
    h1p, h2p, h3p, outp = (_round_up(d, LANE) for d in (h1, h2, h3, out))
    return {
        "w1": _pad2d(params["w1"], k, h1p).astype(jnp.bfloat16),
        "b1": _pad2d(params["b1"], 1, h1p),
        "w2": _pad2d(params["w2"], h1p, h2p).astype(jnp.bfloat16),
        "b2": _pad2d(params["b2"], 1, h2p),
        "w3": _pad2d(params["w3"], h2p, h3p).astype(jnp.bfloat16),
        "b3": _pad2d(params["b3"], 1, h3p),
        "w4": _pad2d(params["w4"], h3p, outp).astype(jnp.bfloat16),
        "b4": _pad2d(params["b4"], 1, outp),
        "out_features": out,  # python int, used only for the final slice
    }


def mlp_forward(x, prepped, *, tb=512):
    """x: (B, in_features) f32.  prepped: output of prepare_params."""
    B, K = x.shape
    assert K == prepped["w1"].shape[0]
    outp = prepped["w4"].shape[1]
    n_out = prepped["out_features"]

    # Batch tile:
    #  * B < 16: one small sublane-aligned tile (grid of 1, no pipeline
    #    overhead).
    #  * B >= 16: at least 2 grid steps (v7x has 2 TensorCores; "parallel"
    #    only helps with >= 2 steps), capped at tb=512 rows so big batches
    #    use large tiles (~85% of HBM roofline) while VMEM stays small
    #    (512x1701 f32 double-buffered ~ 6.6 MiB, fine even on v5e's 16 MiB
    #    scoped default).
    if B < 2 * SUBLANE:
        tb_eff = _round_up(max(B, 1), SUBLANE)
    else:
        tb_eff = min(tb, _round_up(pl.cdiv(B, 2), SUBLANE))
    b_pad = _round_up(B, tb_eff)
    # Only a zero batch-pad when B doesn't divide the tile; no dtype change,
    # no K pad (x itself is never rewritten in the common case).
    x_in = x if b_pad == B else jnp.pad(x, ((0, b_pad - B), (0, 0)))

    def rep(shape):
        # Grid-invariant operand: constant block index => resident in VMEM
        # across grid steps; Buffered(1) skips the useless second buffer.
        return pl.BlockSpec(shape, lambda i: (0, 0),
                            pipeline_mode=pl.Buffered(1))

    grid_spec = pltpu.PrefetchScalarGridSpec(
        num_scalar_prefetch=0,
        grid=(b_pad // tb_eff,),
        in_specs=[
            pl.BlockSpec((tb_eff, K), lambda i: (i, 0)),   # f32 x batch tile
            rep(prepped["w1"].shape), rep(prepped["b1"].shape),
            rep(prepped["w2"].shape), rep(prepped["b2"].shape),
            rep(prepped["w3"].shape), rep(prepped["b3"].shape),
            rep(prepped["w4"].shape), rep(prepped["b4"].shape),
        ],
        out_specs=pl.BlockSpec((tb_eff, outp), lambda i: (i, 0)),
    )

    out = pl.pallas_call(
        mlp_kernel,
        out_shape=jax.ShapeDtypeStruct((b_pad, outp), jnp.float32),
        grid_spec=grid_spec,
        compiler_params=pltpu.CompilerParams(
            dimension_semantics=("parallel",)),
    )(x_in, prepped["w1"], prepped["b1"], prepped["w2"], prepped["b2"],
      prepped["w3"], prepped["b3"], prepped["w4"], prepped["b4"])
    return out[:B, :n_out]


def init_params(key, in_features=1701, h1=100, h2=100, h3=100, out_features=1):
    """Deterministic init mimicking nn.Linear's U(-1/sqrt(fan_in), 1/sqrt(fan_in))."""
    dims = [(in_features, h1), (h1, h2), (h2, h3), (h3, out_features)]
    params = {}
    for idx, (fan_in, fan_out) in enumerate(dims, start=1):
        key, kw, kb = jax.random.split(key, 3)
        bound = 1.0 / math.sqrt(fan_in)
        params[f"w{idx}"] = jax.random.uniform(
            kw, (fan_in, fan_out), jnp.float32, minval=-bound, maxval=bound)
        params[f"b{idx}"] = jax.random.uniform(
            kb, (1, fan_out), jnp.float32, minval=-bound, maxval=bound)
    return params


def mlp_reference(x, p):
    h = jnp.maximum(x @ p["w1"] + p["b1"], 0.0)
    h = jnp.maximum(h @ p["w2"] + p["b2"], 0.0)
    h = jnp.maximum(h @ p["w3"] + p["b3"], 0.0)
    return jnp.maximum(h @ p["w4"] + p["b4"], 0.0)


if __name__ == "__main__":
    key = jax.random.PRNGKey(0)
    kx_small, kx_multi, kp = jax.random.split(key, 3)

    IN = 1701
    params = init_params(kp, in_features=IN)
    prepped = prepare_params(params)

    # Small-batch path: one sublane-aligned tile, grid of 1.
    x_small = jax.random.normal(kx_small, (8, IN), jnp.float32)
    out_small = jax.block_until_ready(mlp_forward(x_small, prepped))
    ref_small = mlp_reference(x_small, params)
    assert out_small.shape == (8, 1), out_small.shape
    assert jnp.allclose(out_small, ref_small, atol=3e-2, rtol=3e-2), \
        "small-batch mismatch vs reference"

    # Multi-tile path: B=64 -> 2 grid steps of 32 rows (both TCs on v7x).
    x_multi = jax.random.normal(kx_multi, (64, IN), jnp.float32)
    out_multi = jax.block_until_ready(mlp_forward(x_multi, prepped))
    ref_multi = mlp_reference(x_multi, params)
    assert out_multi.shape == (64, 1), out_multi.shape
    assert jnp.allclose(out_multi, ref_multi, atol=3e-2, rtol=3e-2), \
        "multi-tile mismatch vs reference"

    print("KERNEL_OK")
</pallas_src>

<mosaic_0001>
module attributes {stable_mosaic.version = 11 : i64} {
  func.func @mlp_kernel(%arg0: i32, %arg1: memref<8x1701xf32, #tpu.memory_space<vmem>>, %arg2: memref<1701x128xbf16, #tpu.memory_space<vmem>>, %arg3: memref<1x128xf32, #tpu.memory_space<vmem>>, %arg4: memref<128x128xbf16, #tpu.memory_space<vmem>>, %arg5: memref<1x128xf32, #tpu.memory_space<vmem>>, %arg6: memref<128x128xbf16, #tpu.memory_space<vmem>>, %arg7: memref<1x128xf32, #tpu.memory_space<vmem>>, %arg8: memref<128x128xbf16, #tpu.memory_space<vmem>>, %arg9: memref<1x128xf32, #tpu.memory_space<vmem>>, %arg10: memref<8x128xf32, #tpu.memory_space<vmem>>) attributes {dimension_semantics = [#tpu.dimension_semantics<parallel>], iteration_bounds = array<i64: 1>, scalar_prefetch = 0 : i64, scratch_operands = 0 : i64, tpu.core_type = #tpu.core_type<tc>, window_params = [{transform_indices = @transform_0, window_bounds = array<i64: 8, 1701>}, {pipeline_mode = #tpu.pipeline_mode<synchronous>, transform_indices = @transform_1, window_bounds = array<i64: 1701, 128>}, {pipeline_mode = #tpu.pipeline_mode<synchronous>, transform_indices = @transform_2, window_bounds = array<i64: 1, 128>}, {pipeline_mode = #tpu.pipeline_mode<synchronous>, transform_indices = @transform_3, window_bounds = array<i64: 128, 128>}, {pipeline_mode = #tpu.pipeline_mode<synchronous>, transform_indices = @transform_4, window_bounds = array<i64: 1, 128>}, {pipeline_mode = #tpu.pipeline_mode<synchronous>, transform_indices = @transform_5, window_bounds = array<i64: 128, 128>}, {pipeline_mode = #tpu.pipeline_mode<synchronous>, transform_indices = @transform_6, window_bounds = array<i64: 1, 128>}, {pipeline_mode = #tpu.pipeline_mode<synchronous>, transform_indices = @transform_7, window_bounds = array<i64: 128, 128>}, {pipeline_mode = #tpu.pipeline_mode<synchronous>, transform_indices = @transform_8, window_bounds = array<i64: 1, 128>}, {transform_indices = @transform_9, window_bounds = array<i64: 8, 128>}]} {
    %c0 = arith.constant 0 : index
    %c0_0 = arith.constant 0 : index
    %0 = vector.load %arg1[%c0, %c0_0] : memref<8x1701xf32, #tpu.memory_space<vmem>>, vector<8x1701xf32>
    %1 = arith.truncf %0 : vector<8x1701xf32> to vector<8x1701xbf16>
    %c0_1 = arith.constant 0 : index
    %c0_2 = arith.constant 0 : index
    %2 = vector.load %arg2[%c0_1, %c0_2] : memref<1701x128xbf16, #tpu.memory_space<vmem>>, vector<1701x128xbf16>
    %cst = arith.constant dense<0.000000e+00> : vector<8x128xf32>
    %3 = tpu.matmul %1, %2, %cst {dimension_numbers = #tpu.dot_dimension_numbers<[1], [0], [0], [1], [0, 0, 1, 1], [], []>} : vector<8x1701xbf16>, vector<1701x128xbf16>, vector<8x128xf32> -> vector<8x128xf32>
    %c0_3 = arith.constant 0 : index
    %c0_4 = arith.constant 0 : index
    %4 = vector.load %arg3[%c0_3, %c0_4] : memref<1x128xf32, #tpu.memory_space<vmem>>, vector<1x128xf32>
    %5 = vector.broadcast %4 : vector<1x128xf32> to vector<8x128xf32>
    %6 = arith.addf %3, %5 : vector<8x128xf32>
    %cst_5 = arith.constant 0.000000e+00 : f32
    %7 = vector.broadcast %cst_5 : f32 to vector<8x128xf32>
    %8 = arith.maximumf %6, %7 : vector<8x128xf32>
    %9 = arith.truncf %8 : vector<8x128xf32> to vector<8x128xbf16>
    %c0_6 = arith.constant 0 : index
    %c0_7 = arith.constant 0 : index
    %10 = vector.load %arg4[%c0_6, %c0_7] : memref<128x128xbf16, #tpu.memory_space<vmem>>, vector<128x128xbf16>
    %cst_8 = arith.constant dense<0.000000e+00> : vector<8x128xf32>
    %11 = tpu.matmul %9, %10, %cst_8 {dimension_numbers = #tpu.dot_dimension_numbers<[1], [0], [0], [1], [0, 0, 1, 1], [], []>} : vector<8x128xbf16>, vector<128x128xbf16>, vector<8x128xf32> -> vector<8x128xf32>
    %c0_9 = arith.constant 0 : index
    %c0_10 = arith.constant 0 : index
    %12 = vector.load %arg5[%c0_9, %c0_10] : memref<1x128xf32, #tpu.memory_space<vmem>>, vector<1x128xf32>
    %13 = vector.broadcast %12 : vector<1x128xf32> to vector<8x128xf32>
    %14 = arith.addf %11, %13 : vector<8x128xf32>
    %cst_11 = arith.constant 0.000000e+00 : f32
    %15 = vector.broadcast %cst_11 : f32 to vector<8x128xf32>
    %16 = arith.maximumf %14, %15 : vector<8x128xf32>
    %17 = arith.truncf %16 : vector<8x128xf32> to vector<8x128xbf16>
    %c0_12 = arith.constant 0 : index
    %c0_13 = arith.constant 0 : index
    %18 = vector.load %arg6[%c0_12, %c0_13] : memref<128x128xbf16, #tpu.memory_space<vmem>>, vector<128x128xbf16>
    %cst_14 = arith.constant dense<0.000000e+00> : vector<8x128xf32>
    %19 = tpu.matmul %17, %18, %cst_14 {dimension_numbers = #tpu.dot_dimension_numbers<[1], [0], [0], [1], [0, 0, 1, 1], [], []>} : vector<8x128xbf16>, vector<128x128xbf16>, vector<8x128xf32> -> vector<8x128xf32>
    %c0_15 = arith.constant 0 : index
    %c0_16 = arith.constant 0 : index
    %20 = vector.load %arg7[%c0_15, %c0_16] : memref<1x128xf32, #tpu.memory_space<vmem>>, vector<1x128xf32>
    %21 = vector.broadcast %20 : vector<1x128xf32> to vector<8x128xf32>
    %22 = arith.addf %19, %21 : vector<8x128xf32>
    %cst_17 = arith.constant 0.000000e+00 : f32
    %23 = vector.broadcast %cst_17 : f32 to vector<8x128xf32>
    %24 = arith.maximumf %22, %23 : vector<8x128xf32>
    %25 = arith.truncf %24 : vector<8x128xf32> to vector<8x128xbf16>
    %c0_18 = arith.constant 0 : index
    %c0_19 = arith.constant 0 : index
    %26 = vector.load %arg8[%c0_18, %c0_19] : memref<128x128xbf16, #tpu.memory_space<vmem>>, vector<128x128xbf16>
    %cst_20 = arith.constant dense<0.000000e+00> : vector<8x128xf32>
    %27 = tpu.matmul %25, %26, %cst_20 {dimension_numbers = #tpu.dot_dimension_numbers<[1], [0], [0], [1], [0, 0, 1, 1], [], []>} : vector<8x128xbf16>, vector<128x128xbf16>, vector<8x128xf32> -> vector<8x128xf32>
    %c0_21 = arith.constant 0 : index
    %c0_22 = arith.constant 0 : index
    %28 = vector.load %arg9[%c0_21, %c0_22] : memref<1x128xf32, #tpu.memory_space<vmem>>, vector<1x128xf32>
    %29 = vector.broadcast %28 : vector<1x128xf32> to vector<8x128xf32>
    %30 = arith.addf %27, %29 : vector<8x128xf32>
    %cst_23 = arith.constant 0.000000e+00 : f32
    %31 = vector.broadcast %cst_23 : f32 to vector<8x128xf32>
    %32 = arith.maximumf %30, %31 : vector<8x128xf32>
    %c0_24 = arith.constant 0 : index
    %c0_25 = arith.constant 0 : index
    %33 = vector.load %arg10[%c0_24, %c0_25] : memref<8x128xf32, #tpu.memory_space<vmem>>, vector<8x128xf32>
    tpu.vector_store %arg10[%c0_24, %c0_25], %32 {strides = array<i32>} : memref<8x128xf32, #tpu.memory_space<vmem>>, vector<8x128xf32>,
    return
  }
  func.func @transform_0(%arg0: i32) -> (i32, i32) {
    %c0_i32 = arith.constant 0 : i32
    %c0_i32_0 = arith.constant 0 : i32
    return %arg0, %c0_i32 : i32, i32
  }
  func.func @transform_1(%arg0: i32) -> (i32, i32) {
    %c0_i32 = arith.constant 0 : i32
    %c0_i32_0 = arith.constant 0 : i32
    %c0_i32_1 = arith.constant 0 : i32
    return %c0_i32, %c0_i32_0 : i32, i32
  }
  func.func @transform_2(%arg0: i32) -> (i32, i32) {
    %c0_i32 = arith.constant 0 : i32
    %c0_i32_0 = arith.constant 0 : i32
    %c0_i32_1 = arith.constant 0 : i32
    return %c0_i32, %c0_i32_0 : i32, i32
  }
  func.func @transform_3(%arg0: i32) -> (i32, i32) {
    %c0_i32 = arith.constant 0 : i32
    %c0_i32_0 = arith.constant 0 : i32
    %c0_i32_1 = arith.constant 0 : i32
    return %c0_i32, %c0_i32_0 : i32, i32
  }
  func.func @transform_4(%arg0: i32) -> (i32, i32) {
    %c0_i32 = arith.constant 0 : i32
    %c0_i32_0 = arith.constant 0 : i32
    %c0_i32_1 = arith.constant 0 : i32
    return %c0_i32, %c0_i32_0 : i32, i32
  }
  func.func @transform_5(%arg0: i32) -> (i32, i32) {
    %c0_i32 = arith.constant 0 : i32
    %c0_i32_0 = arith.constant 0 : i32
    %c0_i32_1 = arith.constant 0 : i32
    return %c0_i32, %c0_i32_0 : i32, i32
  }
  func.func @transform_6(%arg0: i32) -> (i32, i32) {
    %c0_i32 = arith.constant 0 : i32
    %c0_i32_0 = arith.constant 0 : i32
    %c0_i32_1 = arith.constant 0 : i32
    return %c0_i32, %c0_i32_0 : i32, i32
  }
  func.func @transform_7(%arg0: i32) -> (i32, i32) {
    %c0_i32 = arith.constant 0 : i32
    %c0_i32_0 = arith.constant 0 : i32
    %c0_i32_1 = arith.constant 0 : i32
    return %c0_i32, %c0_i32_0 : i32, i32
  }
  func.func @transform_8(%arg0: i32) -> (i32, i32) {
    %c0_i32 = arith.constant 0 : i32
    %c0_i32_0 = arith.constant 0 : i32
    %c0_i32_1 = arith.constant 0 : i32
    return %c0_i32, %c0_i32_0 : i32, i32
  }
  func.func @transform_9(%arg0: i32) -> (i32, i32) {
    %c0_i32 = arith.constant 0 : i32
    %c0_i32_0 = arith.constant 0 : i32
    return %arg0, %c0_i32 : i32, i32
  }
}

</mosaic_0001>

<bundles_post_ra>
// kernel: tpu_custom_call.1
= control target key start
LH: loop header
LB: loop body
LE: loop exit
PB: predicated region body
PF: predicated region fallthrough
CT: control target
= control target key end

     0   :  { %14 = vsyncpa [#allocation3], 0  ;;  %s2462_s0 = inlined_call_operand.hbm [shape: f32[8,1701], index: 0, kind: input, shape index: {}]   ;;  %s2463_s1 = inlined_call_operand.hbm [shape: bf16[1701,128], index: 1, kind: input, shape index: {}]   ;;  %s2464_s2 = inlined_call_operand.vmem [shape: f32[1,128], index: 2, kind: input, shape index: {}]   ;;  %s2465_s3 = inlined_call_operand.hbm [shape: bf16[128,128], index: 3, kind: input, shape index: {}]   ;;  %s2466_s4 = inlined_call_operand.vmem [shape: f32[1,128], index: 4, kind: input, shape index: {}]   ;;  %s2467_s5 = inlined_call_operand.hbm [shape: bf16[128,128], index: 5, kind: input, shape index: {}]   ;;  %s2468_s6 = inlined_call_operand.vmem [shape: f32[1,128], index: 6, kind: input, shape index: {}]   ;;  %s2469_s7 = inlined_call_operand.hbm [shape: bf16[128,128], index: 7, kind: input, shape index: {}]   ;;  %s2470_s8 = inlined_call_operand.vmem [shape: f32[1,128], index: 8, kind: input, shape index: {}]   ;;  %s2471_s9 = inlined_call_operand.hbm [shape: f32[8,128], index: 9, kind: output, shape index: {}]  }
   0x1   :  { %15 = vsyncpa [#allocation6], 0 }
   0x2   :  { %16 = vsyncpa [#allocation9], 0 }
   0x3   :  { %17 = vsyncpa [#allocation4], 0  ;;  %s2274_s30 = smov [#allocation5]   ;;  %s2134_s13 = scalar_lea.hbm %s2463_s1, 13632 }
   0x4   :  { %s33_s10 = sshll.u32 %s2274_s30, 4  ;;  %p2135_p0 = scmp.ne.s32.totalorder %s2463_s1, %s2134_s13  ;;  %s34_s10 = int_to_ptr.vmem [resolvable:$true] %s33_s10 }
   0x5   :  { %p2138_p1 = scmp.lt.u32.totalorder %s2134_s13, %s2463_s1 }
   0x7   :  { %p2140_p2 = pnand %p2138_p1, %p2135_p0 }
   0x9   :  { %2143 = shalt.err (!%p2140_p2)
}
   0xa   :  { %s2144_s18 = scalar_lea.vmem %s34_s10, 13632  ;;  %p2149_p4 = scmp.lt.s32.totalorder %s34_s10, %s34_s10 }
   0xb   :  { %p2145_p3 = scmp.ne.s32.totalorder %s34_s10, %s2144_s18  ;;  %p2150_p5 = scmp.lt.s32.totalorder %s2144_s18, %s2144_s18 }
   0xd   :  { %p2151_p6 = por %p2150_p5, %p2149_p4 }
   0xf   :  { %p2152_p7 = pnand %p2151_p6, %p2145_p3 }
  0x11   :  { %2155 = shalt.err (!%p2152_p7)
}
  0x12   :  { %s2275_s19 = smov 64   ;;  %s2276_s20 = smov 4  }
  0x13   :  { %39 = dma.hbm_to_vmem [thread:$0]  %s2463_s1, 13632, %s34_s10, [#allocation6], %s2275_s19, %s2275_s19, %s2276_s20  }
  0x14   :  { %s2277_s23 = smov [#allocation8]   ;;  %s2278_s25 = smov [#allocation2]  }
  0x15   :  { %s61_s24 = sshll.u32 %s2277_s23, 4  ;;  %s24_s26 = sshll.u32 %s2278_s25, 4  ;;  %s62_s24 = int_to_ptr.vmem [resolvable:$true] %s61_s24  ;;  %s25_s26 = int_to_ptr.vmem [resolvable:$true] %s24_s26 }
  0x16   :  { %s2156_s29 = scalar_lea.hbm %s2467_s5, 1024 }
  0x17   :  { %p2157_p8 = scmp.ne.s32.totalorder %s2467_s5, %s2156_s29  ;;  %p2160_p9 = scmp.lt.u32.totalorder %s2156_s29, %s2467_s5 }
  0x19   :  { %p2162_p10 = pnand %p2160_p9, %p2157_p8 }
  0x1b   :  { %2165 = shalt.err (!%p2162_p10)
}
  0x1c   :  { %s2166_s1 = scalar_lea.vmem %s62_s24, 1024  ;;  %p2171_p12 = scmp.lt.s32.totalorder %s62_s24, %s62_s24 }
  0x1d   :  { %p2167_p11 = scmp.ne.s32.totalorder %s62_s24, %s2166_s1  ;;  %p2172_p13 = scmp.lt.s32.totalorder %s2166_s1, %s2166_s1 }
  0x1f   :  { %p2173_p0 = por %p2172_p13, %p2171_p12 }
  0x21   :  { %p2174_p1 = pnand %p2173_p0, %p2167_p11 }
  0x23   :  { %2177 = shalt.err (!%p2174_p1)
}
  0x24   :  { %67 = dma.hbm_to_vmem [thread:$0]  %s2467_s5, 1024, %s62_s24, [#allocation9], %s2275_s19, %s2275_s19, %s2276_s20  }
  0x25   :  { %s2178_s17 = scalar_lea.hbm %s2462_s0, 1792 }
  0x26   :  { %p2179_p2 = scmp.ne.s32.totalorder %s2462_s0, %s2178_s17  ;;  %p2182_p3 = scmp.lt.u32.totalorder %s2178_s17, %s2462_s0 }
  0x28   :  { %p2184_p4 = pnand %p2182_p3, %p2179_p2 }
  0x2a   :  { %2187 = shalt.err (!%p2184_p4)
}
  0x2b   :  { %s2188_s25 = scalar_lea.vmem %s25_s26, 1792  ;;  %p2193_p6 = scmp.lt.s32.totalorder %s25_s26, %s25_s26 }
  0x2c   :  { %p2189_p5 = scmp.ne.s32.totalorder %s25_s26, %s2188_s25  ;;  %p2194_p7 = scmp.lt.s32.totalorder %s2188_s25, %s2188_s25 }
  0x2e   :  { %p2195_p8 = por %p2194_p7, %p2193_p6 }
  0x30   :  { %p2196_p9 = pnand %p2195_p8, %p2189_p5 }
  0x32   :  { %2199 = shalt.err (!%p2196_p9)
}
  0x33   :  { %27 = dma.hbm_to_vmem [thread:$0]  %s2462_s0, 1792, %s25_s26, [#allocation3]  }
  0x34   :  { %s2279_s27 = smov [#allocation7]   ;;  %s2280_s29 = smov [#allocation10]  }
  0x35   :  { %s47_s28 = sshll.u32 %s2279_s27, 4  ;;  %s75_s30 = sshll.u32 %s2280_s29, 4  ;;  %s48_s28 = int_to_ptr.vmem [resolvable:$true] %s47_s28  ;;  %s76_s30 = int_to_ptr.vmem [resolvable:$true] %s75_s30 }
  0x36   :  { %s2200_s13 = scalar_lea.hbm %s2465_s3, 1024 }
  0x37   :  { %p2201_p10 = scmp.ne.s32.totalorder %s2465_s3, %s2200_s13  ;;  %p2204_p11 = scmp.lt.u32.totalorder %s2200_s13, %s2465_s3 }
  0x39   :  { %p2206_p12 = pnand %p2204_p11, %p2201_p10 }
  0x3b   :  { %2209 = shalt.err (!%p2206_p12)
}
  0x3c   :  { %s2210_s0 = scalar_lea.vmem %s48_s28, 1024  ;;  %p2215_p0 = scmp.lt.s32.totalorder %s48_s28, %s48_s28 }
  0x3d   :  { %p2211_p13 = scmp.ne.s32.totalorder %s48_s28, %s2210_s0  ;;  %p2216_p1 = scmp.lt.s32.totalorder %s2210_s0, %s2210_s0 }
  0x3f   :  { %p2217_p2 = por %p2216_p1, %p2215_p0 }
  0x41   :  { %p2218_p3 = pnand %p2217_p2, %p2211_p13 }
  0x43   :  { %2221 = shalt.err (!%p2218_p3)
}
  0x44   :  { %53 = dma.hbm_to_vmem [thread:$0]  %s2465_s3, 1024, %s48_s28, [#allocation6], %s2275_s19, %s2275_s19, %s2276_s20  }
  0x45   :  { %s2222_s21 = scalar_lea.hbm %s2469_s7, 1024 }
  0x46   :  { %p2223_p4 = scmp.ne.s32.totalorder %s2469_s7, %s2222_s21  ;;  %p2226_p5 = scmp.lt.u32.totalorder %s2222_s21, %s2469_s7 }
  0x48   :  { %p2228_p6 = pnand %p2226_p5, %p2223_p4 }
  0x4a   :  { %2231 = shalt.err (!%p2228_p6)
}
  0x4b   :  { %s2232_s24 = scalar_lea.vmem %s76_s30, 1024  ;;  %p2237_p8 = scmp.lt.s32.totalorder %s76_s30, %s76_s30 }
  0x4c   :  { %p2233_p7 = scmp.ne.s32.totalorder %s76_s30, %s2232_s24  ;;  %p2238_p9 = scmp.lt.s32.totalorder %s2232_s24, %s2232_s24 }
  0x4e   :  { %p2239_p10 = por %p2238_p9, %p2237_p8 }
  0x50   :  { %p2240_p11 = pnand %p2239_p10, %p2233_p7 }
  0x52   :  { %2243 = shalt.err (!%p2240_p11)
}
  0x53   :  { %81 = dma.hbm_to_vmem [thread:$0]  %s2469_s7, 1024, %s76_s30, [#allocation9], %s2275_s19, %s2275_s19, %s2276_s20  }
  0x54   :  { %2266 = dma.done.wait [#allocation3], 1792  }
  0x55   :  { %2267 = vsyncadd [#allocation3], 4294965504 }
  0x56   :  { %2268 = dma.done.wait [#allocation6], 14656  }
  0x57   :  { %2269 = vsyncadd [#allocation6], 4294952640 }
  0x58   :  { %2270 = dma.done.wait [#allocation9], 2048  }
  0x59   :  { %2271 = vsyncadd [#allocation9], 4294965248  ;;  %v2003_v0 = vld [vmem:[#allocation5 + $0x40] sm:$0xff]   ;;  %v2007_v4 = vld [vmem:[#allocation5 + $0x48] sm:$0xff]   ;;  %vm987_vm0 = vcmask 302080   ;;  %vm991_vm1 = vcmask 1041408  }
  0x5a   :  { %v2004_v1 = vld [vmem:[#allocation5] sm:$0xff]   ;;  %1772 = vmatprep.subr.bf16.mxu0 %v2003_v0  ;;  %v2008_v5 = vld [vmem:[#allocation5 + $0x8] sm:$0xff]   ;;  %v2011_v8 = vld [vmem:[#allocation5 + $0x50] sm:$0xff]   ;;  %vm992_vm2 = vcmask 1042432   ;;  %vm2284_vm3 = vmmov 0   ;;  %s2285_s11 = smov [#allocation11]  }
  0x5b   :  { %v2005_v2 = vld [vmem:[#allocation5 + $0xc0] sm:$0xff]   ;;  %1773 = vmatpush3.bf16.msra.mxu0 %v2004_v1  ;;  %v2009_v6 = vld [vmem:[#allocation5 + $0xc8] sm:$0xff]   ;;  %v2012_v9 = vld [vmem:[#allocation5 + $0x10] sm:$0xff]   ;;  %s1625_s12 = sshll.u32 %s2285_s11, 4  ;;  %s1626_s12 = int_to_ptr.vmem [resolvable:$true] %s1625_s12 }
  0x5c   :  { %v2006_v3 = vld [vmem:[#allocation5 + $0x80] sm:$0xff]   ;;  %1794 = vmatprep.subr.bf16.mxu1 %v2005_v2  ;;  %1774 = vmatprep.subr.bf16.mxu0 %v2007_v4  ;;  %v2010_v7 = vld [vmem:[#allocation5 + $0x88] sm:$0xff]   ;;  %v2013_v10 = vld [vmem:[#allocation5 + $0xd0] sm:$0xff]   ;;  %p2249_p13 = scmp.lt.s32.totalorder %s1626_s12, %s1626_s12 }
  0x5d   :  { %1795 = vmatpush3.bf16.msra.mxu1 %v2006_v3  ;;  %v2014_v11 = vld [vmem:[#allocation5 + $0x90] sm:$0xff]   ;;  %v2015_v12 = vld [vmem:[#allocation5 + $0x58] sm:$0xff]   ;;  %v2019_v16 = vld [vmem:[#allocation5 + $0x60] sm:$0xff]  }
  0x5e   :  { %1796 = vmatprep.subr.bf16.mxu1 %v2009_v6  ;;  %v2016_v13 = vld [vmem:[#allocation5 + $0x18] sm:$0xff]   ;;  %v2020_v17 = vld [vmem:[#allocation5 + $0x20] sm:$0xff]   ;;  %v2023_v20 = vld [vmem:[#allocation5 + $0x68] sm:$0xff]  }
  0x5f   :  { %1775 = vmatpush3.bf16.msra.mxu0 %v2008_v5  ;;  %v2017_v14 = vld [vmem:[#allocation5 + $0xd8] sm:$0xff]   ;;  %v2021_v18 = vld [vmem:[#allocation5 + $0xe0] sm:$0xff]   ;;  %v2024_v21 = vld [vmem:[#allocation5 + $0x28] sm:$0xff]  }
  0x60   :  { %1776 = vmatprep.subr.bf16.mxu0 %v2011_v8  ;;  %v2018_v15 = vld [vmem:[#allocation5 + $0x98] sm:$0xff]   ;;  %v2022_v19 = vld [vmem:[#allocation5 + $0xa0] sm:$0xff]   ;;  %v2025_v22 = vld [vmem:[#allocation5 + $0xe8] sm:$0xff]  }
  0x61   :  { %1797 = vmatpush3.bf16.msra.mxu1 %v2010_v7  ;;  %v2026_v23 = vld [vmem:[#allocation5 + $0xa8] sm:$0xff]   ;;  %v2027_v24 = vld [vmem:[#allocation5 + $0x70] sm:$0xff]   ;;  %v2031_v28 = vld [vmem:[#allocation5 + $0x78] sm:$0xff]  }
  0x62   :  { %1798 = vmatprep.subr.bf16.mxu1 %v2013_v10  ;;  %v2028_v25 = vld [vmem:[#allocation5 + $0x30] sm:$0xff]   ;;  %v2032_v29 = vld [vmem:[#allocation5 + $0x38] sm:$0xff]   ;;  %v2035_v36 = vld [vmem:[#allocation5 + $0x140] sm:$0xff]  }
  0x63   :  { %1777 = vmatpush3.bf16.msra.mxu0 %v2012_v9  ;;  %v2029_v26 = vld [vmem:[#allocation5 + $0xf0] sm:$0xff]   ;;  %v2033_v30 = vld [vmem:[#allocation5 + $0xf8] sm:$0xff]   ;;  %v103_v37 = vld [vmem:[#allocation2 + $0x18] sm:$0xff] }
  0x64   :  { %1778 = vmatprep.subr.bf16.mxu0 %v2015_v12  ;;  %v2030_v27 = vld [vmem:[#allocation5 + $0xb0] sm:$0xff]   ;;  %v101_v31 = vld [vmem:[#allocation2 + $0x8] sm:$0xff]  ;;  %v117_v38 = vpack.c.bf16 %v103_v37, %v103_v37  ;;  %v2036_v39 = vld [vmem:[#allocation5 + $0x100] sm:$0xff]  }
  0x65   :  { %1799 = vmatpush3.bf16.msra.mxu1 %v2014_v11  ;;  %v115_v32 = vpack.c.bf16 %v101_v31, %v101_v31  ;;  %v2034_v33 = vld [vmem:[#allocation5 + $0xb8] sm:$0xff]   ;;  %v100_v34 = vld [vmem:[#allocation2] sm:$0xff]  ;;  %v102_v40 = vld [vmem:[#allocation2 + $0x10] sm:$0xff] }
  0x66   :  { %1800 = vmatprep.subr.bf16.mxu1 %v2017_v14  ;;  %v114_v35 = vpack.c.bf16 %v100_v34, %v100_v34  ;;  %1070 = vmatprep.mubr.bf16.mxu1 %v117_v38  ;;  %v116_v41 = vpack.c.bf16 %v102_v40, %v102_v40  ;;  %v2037_v42 = vld [vmem:[#allocation5 + $0x1c0] sm:$0xff]   ;;  %v2039_v44 = vld [vmem:[#allocation5 + $0x148] sm:$0xff]   ;;  %v2043_v48 = vld [vmem:[#allocation5 + $0x150] sm:$0xff]  }
  0x67   :  { %1779 = vmatpush3.bf16.msra.mxu0 %v2016_v13  ;;  %1030 = vmatprep.mubr.bf16.mxu0 %v115_v32  ;;  %v2038_v43 = vld [vmem:[#allocation5 + $0x180] sm:$0xff]   ;;  %v2040_v45 = vld [vmem:[#allocation5 + $0x108] sm:$0xff]   ;;  %v2044_v49 = vld [vmem:[#allocation5 + $0x110] sm:$0xff]  }
  0x68   :  { %1780 = vmatprep.subr.bf16.mxu0 %v2019_v16  ;;  %v2041_v46 = vld [vmem:[#allocation5 + $0x1c8] sm:$0xff]   ;;  %v2045_v50 = vld [vmem:[#allocation5 + $0x1d0] sm:$0xff]   ;;  %v2047_v52 = vld [vmem:[#allocation5 + $0x158] sm:$0xff]  }
  0x69   :  { %1801 = vmatpush3.bf16.msra.mxu1 %v2018_v15  ;;  %v2042_v47 = vld [vmem:[#allocation5 + $0x188] sm:$0xff]   ;;  %v2046_v51 = vld [vmem:[#allocation5 + $0x190] sm:$0xff]   ;;  %v2048_v53 = vld [vmem:[#allocation5 + $0x118] sm:$0xff]  }
  0x6a   :  { %1802 = vmatprep.subr.bf16.mxu1 %v2021_v18  ;;  %v2049_v54 = vld [vmem:[#allocation5 + $0x1d8] sm:$0xff]   ;;  %v2051_v56 = vld [vmem:[#allocation5 + $0x160] sm:$0xff]   ;;  %v2055_v60 = vld [vmem:[#allocation5 + $0x168] sm:$0xff]  }
  0x6b   :  { %1781 = vmatpush3.bf16.msra.mxu0 %v2020_v17  ;;  %v2050_v55 = vld [vmem:[#allocation5 + $0x198] sm:$0xff]   ;;  %v2052_v57 = vld [vmem:[#allocation5 + $0x120] sm:$0xff]   ;;  %v2056_v61 = vld [vmem:[#allocation5 + $0x128] sm:$0xff]  }
  0x6c   :  { %1782 = vmatprep.subr.bf16.mxu0 %v2023_v20  ;;  %v2053_v58 = vld [vmem:[#allocation5 + $0x1e0] sm:$0xff]   ;;  %v2057_v62 = vld [vmem:[#allocation5 + $0x1e8] sm:$0xff]   ;;  %v2059_v0 = vld [vmem:[#allocation5 + $0x170] sm:$0xff]  }
  0x6d   :  { %1803 = vmatpush3.bf16.msra.mxu1 %v2022_v19  ;;  %v2054_v59 = vld [vmem:[#allocation5 + $0x1a0] sm:$0xff]   ;;  %v2058_v63 = vld [vmem:[#allocation5 + $0x1a8] sm:$0xff]   ;;  %v2060_v1 = vld [vmem:[#allocation5 + $0x130] sm:$0xff]  }
  0x6e   :  { %1804 = vmatprep.subr.bf16.mxu1 %v2025_v22  ;;  %v2061_v2 = vld [vmem:[#allocation5 + $0x1f0] sm:$0xff]   ;;  %v2063_v4 = vld [vmem:[#allocation5 + $0x178] sm:$0xff]   ;;  %v2067_v12 = vld [vmem:[#allocation5 + $0x240] sm:$0xff]  }
  0x6f   :  { %1783 = vmatpush3.bf16.msra.mxu0 %v2024_v21  ;;  %v2062_v3 = vld [vmem:[#allocation5 + $0x1b0] sm:$0xff]   ;;  %v2064_v5 = vld [vmem:[#allocation5 + $0x138] sm:$0xff]   ;;  %v107_v13 = vld [vmem:[#allocation2 + $0x38] sm:$0xff] }
  0x70   :  { %1784 = vmatprep.subr.bf16.mxu0 %v2027_v24  ;;  %v2065_v6 = vld [vmem:[#allocation5 + $0x1f8] sm:$0xff]   ;;  %v104_v10 = vld [vmem:[#allocation2 + $0x20] sm:$0xff]  ;;  %v121_v14 = vpack.c.bf16 %v107_v13, %v107_v13  ;;  %v2068_v15 = vld [vmem:[#allocation5 + $0x200] sm:$0xff]   ;;  %v2283_v13 = vmov 0.0  }
  0x71   :  { %1805 = vmatpush3.bf16.msra.mxu1 %v2026_v23  ;;  %v105_v7 = vld [vmem:[#allocation2 + $0x28] sm:$0xff]  ;;  %v118_v11 = vpack.c.bf16 %v104_v10, %v104_v10  ;;  %v106_v16 = vld [vmem:[#allocation2 + $0x30] sm:$0xff]  ;;  %v2071_v20 = vld [vmem:[#allocation5 + $0x248] sm:$0xff]  }
  0x72   :  { %1806 = vmatprep.subr.bf16.mxu1 %v2029_v26  ;;  %v119_v8 = vpack.c.bf16 %v105_v7, %v105_v7  ;;  %v2066_v9 = vld [vmem:[#allocation5 + $0x1b8] sm:$0xff]   ;;  %v120_v17 = vpack.c.bf16 %v106_v16, %v106_v16  ;;  %v2069_v18 = vld [vmem:[#allocation5 + $0x2c0] sm:$0xff]   ;;  %v2072_v21 = vld [vmem:[#allocation5 + $0x208] sm:$0xff]  }
  0x73   :  { %1785 = vmatpush3.bf16.msra.mxu0 %v2028_v25  ;;  %v2070_v19 = vld [vmem:[#allocation5 + $0x280] sm:$0xff]   ;;  %v2073_v22 = vld [vmem:[#allocation5 + $0x2c8] sm:$0xff]   ;;  %v2075_v24 = vld [vmem:[#allocation5 + $0x250] sm:$0xff]  }
  0x74   :  { %1786 = vmatprep.subr.bf16.mxu0 %v2031_v28  ;;  %v2074_v23 = vld [vmem:[#allocation5 + $0x288] sm:$0xff]   ;;  %v2076_v25 = vld [vmem:[#allocation5 + $0x210] sm:$0xff]   ;;  %v2079_v28 = vld [vmem:[#allocation5 + $0x258] sm:$0xff]  }
  0x75   :  { %1807 = vmatpush3.bf16.msra.mxu1 %v2030_v27  ;;  %v2077_v26 = vld [vmem:[#allocation5 + $0x2d0] sm:$0xff]   ;;  %v2082_v31 = vld [vmem:[#allocation5 + $0x298] sm:$0xff]   ;;  %v2083_v32 = vld [vmem:[#allocation5 + $0x260] sm:$0xff]  }
  0x76   :  { %1808 = vmatprep.subr.bf16.mxu1 %v2033_v30  ;;  %v2078_v27 = vld [vmem:[#allocation5 + $0x290] sm:$0xff]   ;;  %v2081_v30 = vld [vmem:[#allocation5 + $0x2d8] sm:$0xff]   ;;  %v2085_v34 = vld [vmem:[#allocation5 + $0x2e0] sm:$0xff]  }
  0x77   :  { %1787 = vmatpush3.bf16.msra.mxu0 %v2032_v29  ;;  %v2080_v29 = vld [vmem:[#allocation5 + $0x218] sm:$0xff]   ;;  %v2088_v37 = vld [vmem:[#allocation5 + $0x228] sm:$0xff]   ;;  %v2091_v40 = vld [vmem:[#allocation5 + $0x270] sm:$0xff]  }
  0x78   :  { %1816 = vmatprep.subr.bf16.mxu0 %v2035_v36  ;;  %v2087_v36 = vld [vmem:[#allocation5 + $0x268] sm:$0xff]   ;;  %v2109_v7 = vld [vmem:[#allocation5 + $0x350] ss:$0 sps:$4 sm:$0x77]  }
  0x79   :  { %1809 = vmatpush3.bf16.msra.mxu1 %v2034_v33  ;;  %v2084_v33 = vld [vmem:[#allocation5 + $0x220] sm:$0xff]   ;;  %v2089_v38 = vld [vmem:[#allocation5 + $0x2e8] sm:$0xff]   ;;  %v112_v10 = vld [vmem:[#allocation2 + $0x60] sm:$0xff] }
  0x7a   :  { %1031 = vmatmul.mubr.bf16.vlgmr.msra.gmra.mrb[0].mxu0 %v114_v35  ;;  %1838 = vmatprep.subr.bf16.mxu1 %v2037_v42  ;;  %v2086_v35 = vld [vmem:[#allocation5 + $0x2a0] sm:$0xff]   ;;  %v2093_v42 = vld [vmem:[#allocation5 + $0x2f0] sm:$0xff]  }
  0x7b   :  { %1817 = vmatpush3.bf16.msra.mxu0 %v2036_v39  ;;  %1110 = vmatprep.mubr.bf16.mxu0 %v119_v8  ;;  %v2090_v39 = vld [vmem:[#allocation5 + $0x2a8] sm:$0xff]  }
  0x7c   :  { %1071 = vmatmul.mubr.bf16.vlgmr.msra.gmra.mrb[0].mxu1 %v116_v41  ;;  %1818 = vmatprep.subr.bf16.mxu0 %v2039_v44  ;;  %v2092_v41 = vld [vmem:[#allocation5 + $0x230] sm:$0xff]   ;;  %v2095_v44 = vld [vmem:[#allocation5 + $0x278] sm:$0xff]  }
  0x7d   :  { %1839 = vmatpush3.bf16.msra.mxu1 %v2038_v43  ;;  %1150 = vmatprep.mubr.bf16.mxu1 %v121_v14  ;;  %v2094_v43 = vld [vmem:[#allocation5 + $0x2b0] sm:$0xff]   ;;  %v2111_v14 = vld [vmem:[#allocation7 + $0x8] sm:$0xff]  }
  0x7e   :  { %1840 = vmatprep.subr.bf16.mxu1 %v2041_v46  ;;  %v2097_v46 = vld [vmem:[#allocation5 + $0x2f8] sm:$0xff]   ;;  %v2113_v16 = vld [vmem:[#allocation7 + $0x18] sm:$0xff]  }
  0x7f   :  { %1819 = vmatpush3.bf16.msra.mxu0 %v2040_v45  ;;  %v2096_v45 = vld [vmem:[#allocation5 + $0x238] sm:$0xff]  }
  0x80   :  { %1820 = vmatprep.subr.bf16.mxu0 %v2043_v48 }
  0x81   :  { %1841 = vmatpush3.bf16.msra.mxu1 %v2042_v47  ;;  %v109_v47 = vld [vmem:[#allocation2 + $0x48] sm:$0xff] }
  0x82   :  { %1842 = vmatprep.subr.bf16.mxu1 %v2045_v50  ;;  %v123_v48 = vpack.c.bf16 %v109_v47, %v109_v47  ;;  %v108_v50 = vld [vmem:[#allocation2 + $0x40] sm:$0xff] }
  0x83   :  { %1821 = vmatpush3.bf16.msra.mxu0 %v2044_v49  ;;  %v2098_v49 = vld [vmem:[#allocation5 + $0x2b8] sm:$0xff]  }
  0x84   :  { %1822 = vmatprep.subr.bf16.mxu0 %v2047_v52  ;;  %v111_v52 = vld [vmem:[#allocation2 + $0x58] sm:$0xff] }
  0x85   :  { %1843 = vmatpush3.bf16.msra.mxu1 %v2046_v51  ;;  %v2281_v51 = vmov 0  }
  0x86   :  { %1844 = vmatprep.subr.bf16.mxu1 %v2049_v54  ;;  %v125_v54 = vpack.c.bf16 %v111_v52, %v111_v52 }
  0x87   :  { %1823 = vmatpush3.bf16.msra.mxu0 %v2048_v53  ;;  %v122_v53 = vpack.c.bf16 %v108_v50, %v108_v50 }
  0x88   :  { %1824 = vmatprep.subr.bf16.mxu0 %v2051_v56  ;;  %v110_v56 = vld [vmem:[#allocation2 + $0x50] sm:$0xff] }
  0x89   :  { %1845 = vmatpush3.bf16.msra.mxu1 %v2050_v55  ;;  %v2099_v55 = vld [vmem:[#allocation5 + $0x300] sm:$0xff]  }
  0x8a   :  { %1846 = vmatprep.subr.bf16.mxu1 %v2053_v58  ;;  %v2100_v58 = vld [vmem:[#allocation5 + $0x308] sm:$0xff]  }
  0x8b   :  { %1825 = vmatpush3.bf16.msra.mxu0 %v2052_v57  ;;  %v124_v57 = vpack.c.bf16 %v110_v56, %v110_v56 }
  0x8c   :  { %1826 = vmatprep.subr.bf16.mxu0 %v2055_v60  ;;  %v113_v60 = vld [vmem:[#allocation2 + $0x68] sm:$0xff] }
  0x8d   :  { %1847 = vmatpush3.bf16.msra.mxu1 %v2054_v59  ;;  %v2101_v59 = vld [vmem:[#allocation5 + $0x310] sm:$0xff]  }
  0x8e   :  { %1848 = vmatprep.subr.bf16.mxu1 %v2057_v62  ;;  %v127_v62 = vpack.c.bf16 %v113_v60, %v113_v60 }
  0x8f   :  { %1827 = vmatpush3.bf16.msra.mxu0 %v2056_v61  ;;  %v2102_v61 = vld [vmem:[#allocation5 + $0x318] sm:$0xff]  }
  0x90   :  { %1828 = vmatprep.subr.bf16.mxu0 %v2059_v0  ;;  %v2104_v0 = vld [vmem:[#allocation5 + $0x328] sm:$0xff]  }
  0x91   :  { %1849 = vmatpush3.bf16.msra.mxu1 %v2058_v63  ;;  %v2103_v63 = vld [vmem:[#allocation5 + $0x320] sm:$0xff]  }
  0x92   :  { %1850 = vmatprep.subr.bf16.mxu1 %v2061_v2  ;;  %v2106_v2 = vld [vmem:[#allocation5 + $0x338] sm:$0xff]  }
  0x93   :  { %1829 = vmatpush3.bf16.msra.mxu0 %v2060_v1  ;;  %v2105_v1 = vld [vmem:[#allocation5 + $0x330] sm:$0xff]  }
  0x94   :  { %1830 = vmatprep.subr.bf16.mxu0 %v2063_v4  ;;  %v2282_v4 = vmov 65535  }
  0x95   :  { %1851 = vmatpush3.bf16.msra.mxu1 %v2062_v3  ;;  %v2107_v3 = vld [vmem:[#allocation5 + $0x340] sm:$0xff]  }
  0x96   :  { %1852 = vmatprep.subr.bf16.mxu1 %v2065_v6  ;;  %v2108_v6 = vld [vmem:[#allocation5 + $0x348] sm:$0xff]  }
  0x97   :  { %1831 = vmatpush3.bf16.msra.mxu0 %v2064_v5  ;;  %v993_v5 = vsel %vm991_vm1, 4294967295, %v2282_v4  ;;  %v2121_v4 = vld [vmem:[#allocation8 + $0x18] sm:$0xff]  }
  0x98   :  { %1860 = vmatprep.subr.bf16.mxu0 %v2067_v12  ;;  %v994_v8 = vsel %vm992_vm2, %v993_v5, 0  ;;  %v2110_v12 = vld [vmem:[#allocation7] sm:$0xff]  }
  0x99   :  { %1853 = vmatpush3.bf16.msra.mxu1 %v2066_v9  ;;  %v996_v9 = vand.u32 %v2109_v7, %v994_v8  ;;  %v2122_v5 = vld [vmem:[#allocation8 + $0x20] sm:$0xff]   ;;  %v2124_v7 = vld [vmem:[#allocation8 + $0x30] sm:$0xff]   ;;  %v2125_v8 = vld [vmem:[#allocation8 + $0x38] sm:$0xff]  }
  0x9a   :  { %1111 = vmatmul.mubr.bf16.vlgmr.msra.gmra.mrb[4].mxu0 %v118_v11  ;;  %1882 = vmatprep.subr.bf16.mxu1 %v2069_v18  ;;  %v126_v11 = vpack.c.bf16 %v112_v10, %v112_v10  ;;  %v2115_v18 = vld [vmem:[#allocation7 + $0x28] sm:$0xff]  }
  0x9b   :  { %1861 = vmatpush3.bf16.msra.mxu0 %v2068_v15  ;;  %1190 = vmatprep.mubr.bf16.mxu0 %v123_v48  ;;  %v2112_v15 = vld [vmem:[#allocation7 + $0x10] sm:$0xff]   ;;  %v2127_v10 = vld [vmem:[#allocation10 + $0x8] sm:$0xff]  }
  0x9c   :  { %1151 = vmatmul.mubr.bf16.vlgmr.msra.gmra.mrb[4].mxu1 %v120_v17  ;;  %1862 = vmatprep.subr.bf16.mxu0 %v2071_v20  ;;  %v2114_v17 = vld [vmem:[#allocation7 + $0x20] sm:$0xff]   ;;  %v2117_v20 = vld [vmem:[#allocation7 + $0x38] sm:$0xff]  }
  0x9d   :  { %1883 = vmatpush3.bf16.msra.mxu1 %v2070_v19  ;;  %1230 = vmatprep.mubr.bf16.mxu1 %v125_v54  ;;  %v2116_v19 = vld [vmem:[#allocation7 + $0x30] sm:$0xff]  }
  0x9e   :  { %1884 = vmatprep.subr.bf16.mxu1 %v2073_v22  ;;  %v1636_v22 = vld [vmem:[%s2464_s2] ss:$0 sm:$0xff] }
  0x9f   :  { %1863 = vmatpush3.bf16.msra.mxu0 %v2072_v21 }
  0xa0   :  { %1864 = vmatprep.subr.bf16.mxu0 %v2075_v24 }
  0xa1   :  { %1885 = vmatpush3.bf16.msra.mxu1 %v2074_v23 }
  0xa2   :  { %1886 = vmatprep.subr.bf16.mxu1 %v2077_v26 }
  0xa3   :  { %1865 = vmatpush3.bf16.msra.mxu0 %v2076_v25 }
  0xa4   :  { %1866 = vmatprep.subr.bf16.mxu0 %v2079_v28 }
  0xa5   :  { %1887 = vmatpush3.bf16.msra.mxu1 %v2078_v27 }
  0xa6   :  { %1888 = vmatprep.subr.bf16.mxu1 %v2081_v30 }
  0xa7   :  { %1867 = vmatpush3.bf16.msra.mxu0 %v2080_v29 }
  0xa8   :  { %1868 = vmatprep.subr.bf16.mxu0 %v2083_v32 }
  0xa9   :  { %1889 = vmatpush3.bf16.msra.mxu1 %v2082_v31 }
  0xaa   :  { %1890 = vmatprep.subr.bf16.mxu1 %v2085_v34 }
  0xab   :  { %1869 = vmatpush3.bf16.msra.mxu0 %v2084_v33 }
  0xac   :  { %1870 = vmatprep.subr.bf16.mxu0 %v2087_v36 }
  0xad   :  { %1891 = vmatpush3.bf16.msra.mxu1 %v2086_v35 }
  0xae   :  { %1892 = vmatprep.subr.bf16.mxu1 %v2089_v38 }
  0xaf   :  { %1871 = vmatpush3.bf16.msra.mxu0 %v2088_v37 }
  0xb0   :  { %1872 = vmatprep.subr.bf16.mxu0 %v2091_v40 }
  0xb1   :  { %1893 = vmatpush3.bf16.msra.mxu1 %v2090_v39 }
  0xb2   :  { %1894 = vmatprep.subr.bf16.mxu1 %v2093_v42 }
  0xb3   :  { %1873 = vmatpush3.bf16.msra.mxu0 %v2092_v41 }
  0xb4   :  { %1874 = vmatprep.subr.bf16.mxu0 %v2095_v44 }
  0xb5   :  { %1895 = vmatpush3.bf16.msra.mxu1 %v2094_v43 }
  0xb6   :  { %1896 = vmatprep.subr.bf16.mxu1 %v2097_v46 }
  0xb7   :  { %1875 = vmatpush3.bf16.msra.mxu0 %v2096_v45 }
  0xb8   :  { %1238 = vmatprep.subr.bf16.mxu0 %v2281_v51 }
  0xb9   :  { %1897 = vmatpush3.bf16.msra.mxu1 %v2098_v49 }
  0xba   :  { %1191 = vmatmul.mubr.bf16.vlgmr.msra.gmra.mrb[8].mxu0 %v122_v53  ;;  %1931 = vmatprep.subr.bf16.mxu1 %v2283_v13 }
  0xbb   :  { %1239 = vmatpush1.bf16.msra.mxu0 %v2099_v55  ;;  %1744 = vmatprep.mubr.msk.bf16.mxu0 %vm987_vm0, %v127_v62 }
  0xbc   :  { %1231 = vmatmul.mubr.bf16.vlgmr.msra.gmra.mrb[8].mxu1 %v124_v57  ;;  %1240 = vmatprep.subr.bf16.mxu0 %v2281_v51 }
  0xbd   :  { %1932 = vmatpush3.bf16.msra.mxu1 %v2110_v12  ;;  %1947 = vmatprep.mubr.msk.bf16.mxu1 %vm2284_vm3, %v2283_v13  ;;  %v2129_v12 = vld [vmem:[#allocation10 + $0x18] sm:$0xff]  }
  0xbe   :  { %1933 = vmatprep.subr.bf16.mxu1 %v2283_v13 }
  0xbf   :  { %1241 = vmatpush1.bf16.msra.mxu0 %v2100_v58 }
  0xc0   :  { %1242 = vmatprep.subr.bf16.mxu0 %v2281_v51 }
  0xc1   :  { %1934 = vmatpush3.bf16.msra.mxu1 %v2111_v14  ;;  %v2130_v14 = vld [vmem:[#allocation10 + $0x20] sm:$0xff]  }
  0xc2   :  { %1935 = vmatprep.subr.bf16.mxu1 %v2283_v13 }
  0xc3   :  { %1243 = vmatpush1.bf16.msra.mxu0 %v2101_v59 }
  0xc4   :  { %1244 = vmatprep.subr.bf16.mxu0 %v2281_v51 }
  0xc5   :  { %1936 = vmatpush3.bf16.msra.mxu1 %v2112_v15  ;;  %v2131_v15 = vld [vmem:[#allocation10 + $0x28] sm:$0xff]  }
  0xc6   :  { %1937 = vmatprep.subr.bf16.mxu1 %v2283_v13 }
  0xc7   :  { %1245 = vmatpush1.bf16.msra.mxu0 %v2102_v61 }
  0xc8   :  { %1246 = vmatprep.subr.bf16.mxu0 %v2281_v51 }
  0xc9   :  { %1938 = vmatpush3.bf16.msra.mxu1 %v2113_v16  ;;  %v1745_v16 = vld [vmem:[%s2466_s4] ss:$0 sm:$0xff] }
  0xca   :  { %1939 = vmatprep.subr.bf16.mxu1 %v2283_v13 }
  0xcb   :  { %1247 = vmatpush1.bf16.msra.mxu0 %v2103_v63 }
  0xcc   :  { %1248 = vmatprep.subr.bf16.mxu0 %v2281_v51 }
  0xcd   :  { %1940 = vmatpush3.bf16.msra.mxu1 %v2114_v17 }
  0xce   :  { %1941 = vmatprep.subr.bf16.mxu1 %v2283_v13 }
  0xcf   :  { %1249 = vmatpush1.bf16.msra.mxu0 %v2104_v0  ;;  %v2118_v0 = vld [vmem:[#allocation8] sm:$0xff]  }
  0xd0   :  { %1250 = vmatprep.subr.bf16.mxu0 %v2281_v51 }
  0xd1   :  { %1942 = vmatpush3.bf16.msra.mxu1 %v2115_v18 }
  0xd2   :  { %1943 = vmatprep.subr.bf16.mxu1 %v2283_v13 }
  0xd3   :  { %1251 = vmatpush1.bf16.msra.mxu0 %v2105_v1 }
  0xd4   :  { %1252 = vmatprep.subr.bf16.mxu0 %v2281_v51 }
  0xd5   :  { %1944 = vmatpush3.bf16.msra.mxu1 %v2116_v19 }
  0xd6   :  { %1945 = vmatprep.subr.bf16.mxu1 %v2283_v13 }
  0xd7   :  { %1253 = vmatpush1.bf16.msra.mxu0 %v2106_v2  ;;  %v2119_v2 = vld [vmem:[#allocation8 + $0x8] sm:$0xff]  }
  0xd8   :  { %1254 = vmatprep.subr.bf16.mxu0 %v2281_v51 }
  0xd9   :  { %1946 = vmatpush3.bf16.msra.mxu1 %v2117_v20 }
  0xda   :  { %1951 = vmatprep.subr.bf16.mxu1 %v2283_v13 }
  0xdb   :  { %1255 = vmatpush1.bf16.msra.mxu0 %v2107_v3  ;;  %v2120_v3 = vld [vmem:[#allocation8 + $0x10] sm:$0xff]  }
  0xdc   :  { %1256 = vmatprep.subr.bf16.mxu0 %v2281_v51 }
  0xdf   :  { %1257 = vmatpush1.bf16.msra.mxu0 %v2108_v6  ;;  %v2123_v6 = vld [vmem:[#allocation8 + $0x28] sm:$0xff]  }
  0xe0   :  { %1258 = vmatprep.subr.bf16.mxu0 %v2281_v51 }
  0xe3   :  { %1259 = vmatpush1.bf16.msra.mxu0 %v996_v9  ;;  %v2126_v9 = vld [vmem:[#allocation10] sm:$0xff]  }
  0xe4   :  { %1971 = vmatprep.subr.bf16.mxu0 %v2283_v13 }
  0xe6   :  { %1271 = vmatmul.mubr.bf16.vlgmr.msra.gmra.mrb[12].mxu0 %v126_v11  ;;  %v2128_v11 = vld [vmem:[#allocation10 + $0x10] sm:$0xff]  }
  0xe7   :  { %1987 = vmatprep.mubr.msk.bf16.mxu0 %vm2284_vm3, %v2283_v13  ;;  %1972 = vmatpush3.bf16.msra.mxu0 %v2126_v9 }
  0xe8   :  { %1973 = vmatprep.subr.bf16.mxu0 %v2283_v13 }
  0xeb   :  { %1974 = vmatpush3.bf16.msra.mxu0 %v2127_v10 }
  0xec   :  { %1975 = vmatprep.subr.bf16.mxu0 %v2283_v13 }
  0xef   :  { %1976 = vmatpush3.bf16.msra.mxu0 %v2128_v11 }
  0xf0   :  { %1977 = vmatprep.subr.bf16.mxu0 %v2283_v13 }
  0xf3   :  { %1978 = vmatpush3.bf16.msra.mxu0 %v2129_v12 }
  0xf4   :  { %1979 = vmatprep.subr.bf16.mxu0 %v2283_v13 }
  0xf7   :  { %1980 = vmatpush3.bf16.msra.mxu0 %v2130_v14 }
  0xf8   :  { %1981 = vmatprep.subr.bf16.mxu0 %v2283_v13 }
  0xfb   :  { %1982 = vmatpush3.bf16.msra.mxu0 %v2131_v15 }
  0xfc   :  { %1983 = vmatprep.subr.bf16.mxu0 %v2283_v13 }
 0x14d   :  { %v1788_v21 = vpop.f32.mrb[0].mxu0 }
 0x14e   :  { %v1789_v23 = vpop.f32.mrb[1].mxu0 }
 0x14f   :  { %v1790_v24 = vadd.f32 %v1789_v23, %v1788_v21  ;;  %v1791_v25 = vpop.f32.mrb[2].mxu0  ;;  %v1810_v26 = vpop.f32.mrb[0].mxu1 }
 0x150   :  { %v1792_v27 = vpop.f32.mrb[3].mxu0  ;;  %v1811_v29 = vpop.f32.mrb[1].mxu1  ;;  %v2133_v25 = vld [vmem:[#allocation10 + $0x38] sm:$0xff]  }
 0x151   :  { %v1033_v28 = vadd.f32 %v1790_v24, %v1636_v22  ;;  %v1812_v30 = vadd.f32 %v1811_v29, %v1810_v26  ;;  %v1813_v31 = vpop.f32.mrb[2].mxu1  ;;  %v2132_v24 = vld [vmem:[#allocation10 + $0x30] sm:$0xff]   ;;  %v1754_v26 = vld [vmem:[%s2468_s6] ss:$0 sm:$0xff]  ;;  %s2244_s6 = scalar_lea.vmem %s1626_s12, 128 }
 0x152   :  { %v1814_v32 = vpop.f32.mrb[3].mxu1  ;;  %1984 = vmatpush3.bf16.msra.mxu0 %v2132_v24  ;;  %p2245_p12 = scmp.ne.s32.totalorder %s1626_s12, %s2244_s6  ;;  %p2250_p0 = scmp.lt.s32.totalorder %s2244_s6, %s2244_s6 }
 0x153   :  { %v1073_v33 = vadd.f32 %v1812_v30, %v1033_v28  ;;  %1985 = vmatprep.subr.bf16.mxu0 %v2283_v13 }
 0x154   :  { %p2251_p1 = por %p2250_p0, %p2249_p13 }
 0x156   :  { %1986 = vmatpush3.bf16.msra.mxu0 %v2133_v25  ;;  %p2252_p2 = pnand %p2251_p1, %p2245_p12 }
 0x16d   :  { %v1832_v34 = vpop.f32.mrb[4].mxu0 }
 0x16e   :  { %v1833_v35 = vpop.f32.mrb[5].mxu0 }
 0x16f   :  { %v1834_v36 = vadd.f32 %v1833_v35, %v1832_v34  ;;  %v1835_v37 = vpop.f32.mrb[6].mxu0  ;;  %v1854_v38 = vpop.f32.mrb[4].mxu1  ;;  %v1763_v34 = vld [vmem:[%s2470_s8] ss:$0 sm:$0xff] }
 0x170   :  { %v1836_v39 = vpop.f32.mrb[7].mxu0  ;;  %v1855_v41 = vpop.f32.mrb[5].mxu1 }
 0x171   :  { %v1113_v40 = vadd.f32 %v1834_v36, %v1073_v33  ;;  %v1856_v42 = vadd.f32 %v1855_v41, %v1854_v38  ;;  %v1857_v43 = vpop.f32.mrb[6].mxu1 }
 0x172   :  { %v1858_v44 = vpop.f32.mrb[7].mxu1 }
 0x173   :  { %v1153_v45 = vadd.f32 %v1856_v42, %v1113_v40 }
 0x18d   :  { %v1876_v46 = vpop.f32.mrb[8].mxu0 }
 0x18e   :  { %v1877_v47 = vpop.f32.mrb[9].mxu0 }
 0x18f   :  { %v1898_v48 = vpop.f32.mrb[8].mxu1  ;;  %v1878_v49 = vadd.f32 %v1877_v47, %v1876_v46  ;;  %v1879_v50 = vpop.f32.mrb[10].mxu0 }
 0x190   :  { %v1899_v51 = vpop.f32.mrb[9].mxu1  ;;  %v1880_v52 = vpop.f32.mrb[11].mxu0 }
 0x191   :  { %v1900_v53 = vadd.f32 %v1899_v51, %v1898_v48  ;;  %v1901_v54 = vpop.f32.mrb[10].mxu1  ;;  %v1193_v55 = vadd.f32 %v1878_v49, %v1153_v45 }
 0x192   :  { %v1902_v56 = vpop.f32.mrb[11].mxu1 }
 0x193   :  { %v1233_v57 = vadd.f32 %v1900_v53, %v1193_v55 }
 0x1b9   :  { %v1272_v58 = vpop.f32.mrb[12].mxu0 }
 0x1ba   :  { %v1273_v59 = vadd.f32 %v1272_v58, %v1233_v57  ;;  %v1274_v60 = vpop.f32.mrb[13].mxu0 }
 0x1bb   :  { %v1275_v61 = vpop.f32.mrb[14].mxu0 }
 0x1bc   :  { %v1278_v62 = vmax.f32 %v1273_v59, 0.0  ;;  %v1276_v63 = vpop.f32.mrb[15].mxu0 }
 0x1be   :  { %v1279_v1 = vpack.c.bf16 %v1278_v62, %v1278_v62 }
 0x1c0   :  { %1948 = vmatmul.mubr.bf16.vlgmr.msra.gmra.mrb[12].mxu1 %v1279_v1 }
 0x1c1   :  { %1952 = vmatpush3.bf16.msra.mxu1 %v2118_v0  ;;  %1967 = vmatprep.mubr.msk.bf16.mxu1 %vm2284_vm3, %v2283_v13 }
 0x1c2   :  { %1953 = vmatprep.subr.bf16.mxu1 %v2283_v13 }
 0x1c5   :  { %1954 = vmatpush3.bf16.msra.mxu1 %v2119_v2 }
 0x1c6   :  { %1955 = vmatprep.subr.bf16.mxu1 %v2283_v13 }
 0x1c9   :  { %1956 = vmatpush3.bf16.msra.mxu1 %v2120_v3 }
 0x1ca   :  { %1957 = vmatprep.subr.bf16.mxu1 %v2283_v13 }
 0x1cd   :  { %1958 = vmatpush3.bf16.msra.mxu1 %v2121_v4 }
 0x1ce   :  { %1959 = vmatprep.subr.bf16.mxu1 %v2283_v13 }
 0x1d1   :  { %1960 = vmatpush3.bf16.msra.mxu1 %v2122_v5 }
 0x1d2   :  { %1961 = vmatprep.subr.bf16.mxu1 %v2283_v13 }
 0x1d5   :  { %1962 = vmatpush3.bf16.msra.mxu1 %v2123_v6 }
 0x1d6   :  { %1963 = vmatprep.subr.bf16.mxu1 %v2283_v13 }
 0x1d9   :  { %1964 = vmatpush3.bf16.msra.mxu1 %v2124_v7 }
 0x1da   :  { %1965 = vmatprep.subr.bf16.mxu1 %v2283_v13 }
 0x1dd   :  { %1966 = vmatpush3.bf16.msra.mxu1 %v2125_v8 }
 0x293   :  { %v1385_v17 = vpop.f32.mrb[12].mxu1 }
 0x294   :  { %v1386_v18 = vadd.f32 %v1745_v16, %v1385_v17  ;;  %v1949_v19 = vpop.f32.mrb[13].mxu1 }
 0x295   :  { %v1388_v20 = vpop.f32.mrb[14].mxu1 }
 0x296   :  { %v1391_v21 = vmax.f32 %v1386_v18, 0.0  ;;  %v1950_v22 = vpop.f32.mrb[15].mxu1 }
 0x298   :  { %v1392_v23 = vpack.c.bf16 %v1391_v21, %v1391_v21 }
 0x29a   :  { %1968 = vmatmul.mubr.bf16.vlgmr.msra.gmra.mrb[16].mxu1 %v1392_v23 }
 0x36d   :  { %v1498_v27 = vpop.f32.mrb[16].mxu1 }
 0x36e   :  { %v1499_v28 = vadd.f32 %v1754_v26, %v1498_v27  ;;  %v1969_v29 = vpop.f32.mrb[17].mxu1 }
 0x36f   :  { %v1501_v30 = vpop.f32.mrb[18].mxu1 }
 0x370   :  { %v1504_v31 = vmax.f32 %v1499_v28, 0.0  ;;  %v1970_v32 = vpop.f32.mrb[19].mxu1 }
 0x372   :  { %v1505_v33 = vpack.c.bf16 %v1504_v31, %v1504_v31 }
 0x374   :  { %1988 = vmatmul.mubr.bf16.vlgmr.msra.gmra.mrb[16].mxu0 %v1505_v33 }
 0x447   :  { %v1611_v35 = vpop.f32.mrb[16].mxu0 }
 0x448   :  { %v1612_v13 = vadd.f32 %v1763_v34, %v1611_v35  ;;  %v1989_v36 = vpop.f32.mrb[17].mxu0 }
 0x449   :  { %v1614_v37 = vpop.f32.mrb[18].mxu0 }
 0x44a   :  { %v1617_v38 = vmax.f32 %v1612_v13, 0.0  ;;  %v1990_v39 = vpop.f32.mrb[19].mxu0 }
 0x44c   :  { %1618 = vst [vmem:[#allocation11] sm:$0xff] %v1617_v38 }
 0x44d   :  { %2255 = shalt.err (!%p2252_p2)
}
 0x44e   :  { %s2256_s8 = scalar_lea.hbm %s2471_s9, 128 }
 0x44f   :  { %p2257_p3 = scmp.ne.s32.totalorder %s2471_s9, %s2256_s8  ;;  %p2260_p4 = scmp.lt.u32.totalorder %s2256_s8, %s2471_s9 }
 0x451   :  { %p2262_p5 = pnand %p2260_p4, %p2257_p3 }
 0x453   :  { %2265 = shalt.err (!%p2262_p5)
}
 0x454   :  { %1628 = dma.vmem_to_hbm [thread:$0]  %s1626_s12, 128, %s2471_s9, [#allocation4]  }
 0x455   :  { %2272 = dma.done.wait [#allocation4], 128  }
 0x456   :  { %2273 = vsyncadd [#allocation4], 4294967168 }
 0x457   :  { %1632 = vsyncpa [#allocation3], 1 }
 0x458   :  { %1633 = vsyncpa [#allocation6], 1 }
 0x459   :  { %1634 = vsyncpa [#allocation9], 1 }
 0x45a   :  { %1635 = vsyncpa [#allocation4], 1 }

</bundles_post_ra>
